<compile_context>
chip_gen: v7x
topology: tpu7x:2x2x1
jax: 0.10.0
libtpu: 0.0.40
codegen_flags: <defaults>
</compile_context>

<pallas_src>
import jax
import jax.numpy as jnp
from jax.experimental import pallas as pl
from jax.experimental.pallas import tpu as pltpu

SUBLANES = 8


def _round_up(x, m):
    return (x + m - 1) // m * m


def dqn_kernel(x_ref, w1_ref, b1_ref, w2_ref, b2_ref, w3_ref, b3_ref,
               q_ref, act_ref):
    # Three MXU matmuls + VPU bias/ReLU fused in VMEM on one batch tile.
    # x is cast to the weight dtype (bf16 on v6e/v7x for ~3x MXU throughput
    # and half the x DMA bytes); accumulation and the bias/ReLU/argmax
    # epilogue stay in f32 for parity with the reference module.
    w1 = w1_ref[...]
    w2 = w2_ref[...]
    w3 = w3_ref[...]

    x = x_ref[...].astype(w1.dtype)
    h1 = jnp.dot(x, w1, preferred_element_type=jnp.float32) + b1_ref[...]
    h1 = jnp.maximum(h1, 0.0)

    h2 = jnp.dot(h1.astype(w2.dtype), w2,
                 preferred_element_type=jnp.float32) + b2_ref[...]
    h2 = jnp.maximum(h2, 0.0)

    q = jnp.dot(h2.astype(w3.dtype), w3,
                preferred_element_type=jnp.float32) + b3_ref[...]
    q_ref[...] = q.astype(q_ref.dtype)

    # Fused greedy-action selection: first index of the row maximum
    # (matches torch/np argmax for finite Q values).
    # TODO(synk): torch.argmax returns the index of a NaN entry; a NaN row
    # here yields the 2**30 sentinel instead.
    col = jax.lax.broadcasted_iota(jnp.int32, q.shape, 1)
    qmax = jnp.max(q, axis=-1, keepdims=True)
    idx = jnp.where(q == qmax, col, jnp.int32(2 ** 30))
    act_ref[...] = jnp.min(idx, axis=-1, keepdims=True).astype(jnp.int32)


def dqn_forward(x, params, *, block_batch=2048):
    """Fused DQN forward.

    Returns (q_values[batch, out_dim], greedy_action[batch]).
    q_values matches `fc3(relu(fc2(relu(fc1(x)))))` of the PyTorch module.
    """
    w1, b1, w2, b2, w3, b3 = params
    batch, input_dim = x.shape
    h1_dim, h2_dim, out_dim = w1.shape[1], w2.shape[1], w3.shape[1]

    # Batch tile: multiple of 8 sublanes, capped at block_batch (<=2048 keeps
    # everything safely inside v5e's 16 MiB scoped-VMEM default); guarantee
    # >=2 grid steps for batch > 512 so both v7x TensorCores share the
    # "parallel" axis (no-op on single-TC v5e/v6e).
    tb = _round_up(min(block_batch, batch), SUBLANES)
    if batch > 512:
        tb = min(tb, _round_up(pl.cdiv(batch, 2), SUBLANES))
    grid_b = pl.cdiv(batch, tb)

    const = lambda i: (0, 0)  # weights/biases: resident, fetched once

    flops = 2 * batch * (input_dim * h1_dim + h1_dim * h2_dim + h2_dim * out_dim)
    bytes_accessed = (
        x.size * x.dtype.itemsize
        + sum(int(p.size) * p.dtype.itemsize for p in params)
        + batch * out_dim * x.dtype.itemsize
        + batch * 4  # int32 actions
    )

    q, act = pl.pallas_call(
        dqn_kernel,
        grid=(grid_b,),
        in_specs=[
            pl.BlockSpec((tb, input_dim), lambda i: (i, 0)),  # x tile (pipelined)
            pl.BlockSpec((input_dim, h1_dim), const),         # w1 (resident)
            pl.BlockSpec((1, h1_dim), const),                 # b1
            pl.BlockSpec((h1_dim, h2_dim), const),            # w2
            pl.BlockSpec((1, h2_dim), const),                 # b2
            pl.BlockSpec((h2_dim, out_dim), const),           # w3
            pl.BlockSpec((1, out_dim), const),                # b3
        ],
        out_specs=[
            pl.BlockSpec((tb, out_dim), lambda i: (i, 0)),    # Q tile (unpadded)
            pl.BlockSpec((tb, 1), lambda i: (i, 0)),          # greedy action
        ],
        out_shape=[
            jax.ShapeDtypeStruct((batch, out_dim), x.dtype),
            jax.ShapeDtypeStruct((batch, 1), jnp.int32),
        ],
        compiler_params=pltpu.CompilerParams(
            dimension_semantics=("parallel",),
        ),
        cost_estimate=pl.CostEstimate(
            flops=flops, transcendentals=0, bytes_accessed=bytes_accessed),
    )(x, w1, b1, w2, b2, w3, b3)

    return q, act[:, 0]


def init_dqn_params(key, input_dim, output_dim):
    """Deterministic init mirroring torch.nn.Linear default (uniform +-1/sqrt(fan_in)).

    Weights are stored (in_features, out_features) so the kernel does x @ W + b.
    """
    def linear(key, fan_in, fan_out):
        kw, kb = jax.random.split(key)
        bound = 1.0 / jnp.sqrt(float(fan_in))
        w = jax.random.uniform(kw, (fan_in, fan_out), jnp.float32, -bound, bound)
        b = jax.random.uniform(kb, (1, fan_out), jnp.float32, -bound, bound)
        return w, b

    k1, k2, k3 = jax.random.split(key, 3)
    w1, b1 = linear(k1, input_dim, 128)
    w2, b2 = linear(k2, 128, 64)
    w3, b3 = linear(k3, 64, output_dim)
    return (w1, b1, w2, b2, w3, b3)


def prep_params_for_tpu(params, matmul_dtype=jnp.bfloat16):
    """One-time parameter prep (do NOT call per forward step).

    Casts weights to the MXU input dtype (bf16 recommended on v6e/v7x where
    f32 matmul is emulated); biases stay f32 so the f32 epilogue is unchanged.
    """
    w1, b1, w2, b2, w3, b3 = params
    return (w1.astype(matmul_dtype), b1,
            w2.astype(matmul_dtype), b2,
            w3.astype(matmul_dtype), b3)


def dqn_reference(x, params):
    """Pure-JAX reference using the same dtypes/accumulation as the kernel."""
    w1, b1, w2, b2, w3, b3 = params
    h = jnp.dot(x.astype(w1.dtype), w1, preferred_element_type=jnp.float32) + b1
    h = jnp.maximum(h, 0.0)
    h = jnp.dot(h.astype(w2.dtype), w2, preferred_element_type=jnp.float32) + b2
    h = jnp.maximum(h, 0.0)
    return jnp.dot(h.astype(w3.dtype), w3, preferred_element_type=jnp.float32) + b3


if __name__ == "__main__":
    input_dim, output_dim = 32, 4
    key = jax.random.PRNGKey(0)
    kx, kp, kx2 = jax.random.split(key, 3)
    params_f32 = init_dqn_params(kp, input_dim, output_dim)

    # --- exact-parity f32 path: small inference-style batch (1 grid step) ---
    batch = 8
    x = jax.random.normal(kx, (batch, input_dim), dtype=jnp.float32)
    q, act = jax.block_until_ready(dqn_forward(x, params_f32))
    ref = dqn_reference(x, params_f32)
    assert q.shape == (batch, output_dim)
    assert act.shape == (batch,)
    assert jnp.allclose(q, ref, atol=1e-5, rtol=1e-5)
    assert jnp.array_equal(act, jnp.argmax(q, axis=-1).astype(jnp.int32))

    # --- bf16-matmul path (recommended on v6e/v7x): replay-style batch ------
    # Weights cast once outside the forward; >1 grid step so both v7x
    # TensorCores are used.
    params_bf16 = prep_params_for_tpu(params_f32, jnp.bfloat16)
    batch2 = 2048
    x2 = jax.random.normal(kx2, (batch2, input_dim), dtype=jnp.float32)
    q2, act2 = jax.block_until_ready(dqn_forward(x2, params_bf16))
    ref2 = dqn_reference(x2, params_bf16)
    assert q2.shape == (batch2, output_dim)
    assert act2.shape == (batch2,)
    assert jnp.allclose(q2, ref2, atol=1e-2, rtol=1e-2)
    # Still close to the exact f32 module output (bf16 weights only).
    assert jnp.allclose(q2, dqn_reference(x2, params_f32), atol=5e-2, rtol=5e-2)
    assert jnp.array_equal(act2, jnp.argmax(q2, axis=-1).astype(jnp.int32))

    print("KERNEL_OK")
</pallas_src>

<mosaic_0001>
module attributes {stable_mosaic.version = 11 : i64} {
  func.func @dqn_kernel(%arg0: i32, %arg1: memref<8x32xf32, #tpu.memory_space<vmem>>, %arg2: memref<32x128xf32, #tpu.memory_space<vmem>>, %arg3: memref<1x128xf32, #tpu.memory_space<vmem>>, %arg4: memref<128x64xf32, #tpu.memory_space<vmem>>, %arg5: memref<1x64xf32, #tpu.memory_space<vmem>>, %arg6: memref<64x4xf32, #tpu.memory_space<vmem>>, %arg7: memref<1x4xf32, #tpu.memory_space<vmem>>, %arg8: memref<8x4xf32, #tpu.memory_space<vmem>>, %arg9: memref<8x1xi32, #tpu.memory_space<vmem>>) attributes {dimension_semantics = [#tpu.dimension_semantics<parallel>], iteration_bounds = array<i64: 1>, scalar_prefetch = 0 : i64, scratch_operands = 0 : i64, tpu.core_type = #tpu.core_type<tc>, window_params = [{transform_indices = @transform_0, window_bounds = array<i64: 8, 32>}, {pipeline_mode = #tpu.pipeline_mode<synchronous>, transform_indices = @transform_1, window_bounds = array<i64: 32, 128>}, {pipeline_mode = #tpu.pipeline_mode<synchronous>, transform_indices = @transform_2, window_bounds = array<i64: 1, 128>}, {pipeline_mode = #tpu.pipeline_mode<synchronous>, transform_indices = @transform_3, window_bounds = array<i64: 128, 64>}, {pipeline_mode = #tpu.pipeline_mode<synchronous>, transform_indices = @transform_4, window_bounds = array<i64: 1, 64>}, {pipeline_mode = #tpu.pipeline_mode<synchronous>, transform_indices = @transform_5, window_bounds = array<i64: 64, 4>}, {pipeline_mode = #tpu.pipeline_mode<synchronous>, transform_indices = @transform_6, window_bounds = array<i64: 1, 4>}, {transform_indices = @transform_7, window_bounds = array<i64: 8, 4>}, {transform_indices = @transform_8, window_bounds = array<i64: 8, 1>}]} {
    %c0 = arith.constant 0 : index
    %c0_0 = arith.constant 0 : index
    %0 = vector.load %arg2[%c0, %c0_0] : memref<32x128xf32, #tpu.memory_space<vmem>>, vector<32x128xf32>
    %c0_1 = arith.constant 0 : index
    %c0_2 = arith.constant 0 : index
    %1 = vector.load %arg4[%c0_1, %c0_2] : memref<128x64xf32, #tpu.memory_space<vmem>>, vector<128x64xf32>
    %c0_3 = arith.constant 0 : index
    %c0_4 = arith.constant 0 : index
    %2 = vector.load %arg6[%c0_3, %c0_4] : memref<64x4xf32, #tpu.memory_space<vmem>>, vector<64x4xf32>
    %c0_5 = arith.constant 0 : index
    %c0_6 = arith.constant 0 : index
    %3 = vector.load %arg1[%c0_5, %c0_6] : memref<8x32xf32, #tpu.memory_space<vmem>>, vector<8x32xf32>
    %cst = arith.constant dense<0.000000e+00> : vector<8x128xf32>
    %4 = tpu.matmul %3, %0, %cst {dimension_numbers = #tpu.dot_dimension_numbers<[1], [0], [0], [1], [0, 0, 1, 1], [], []>} : vector<8x32xf32>, vector<32x128xf32>, vector<8x128xf32> -> vector<8x128xf32>
    %c0_7 = arith.constant 0 : index
    %c0_8 = arith.constant 0 : index
    %5 = vector.load %arg3[%c0_7, %c0_8] : memref<1x128xf32, #tpu.memory_space<vmem>>, vector<1x128xf32>
    %6 = vector.broadcast %5 : vector<1x128xf32> to vector<8x128xf32>
    %7 = arith.addf %4, %6 : vector<8x128xf32>
    %cst_9 = arith.constant 0.000000e+00 : f32
    %8 = vector.broadcast %cst_9 : f32 to vector<8x128xf32>
    %9 = arith.maximumf %7, %8 : vector<8x128xf32>
    %cst_10 = arith.constant dense<0.000000e+00> : vector<8x64xf32>
    %10 = tpu.matmul %9, %1, %cst_10 {dimension_numbers = #tpu.dot_dimension_numbers<[1], [0], [0], [1], [0, 0, 1, 1], [], []>} : vector<8x128xf32>, vector<128x64xf32>, vector<8x64xf32> -> vector<8x64xf32>
    %c0_11 = arith.constant 0 : index
    %c0_12 = arith.constant 0 : index
    %11 = vector.load %arg5[%c0_11, %c0_12] : memref<1x64xf32, #tpu.memory_space<vmem>>, vector<1x64xf32>
    %12 = vector.broadcast %11 : vector<1x64xf32> to vector<8x64xf32>
    %13 = arith.addf %10, %12 : vector<8x64xf32>
    %cst_13 = arith.constant 0.000000e+00 : f32
    %14 = vector.broadcast %cst_13 : f32 to vector<8x64xf32>
    %15 = arith.maximumf %13, %14 : vector<8x64xf32>
    %cst_14 = arith.constant dense<0.000000e+00> : vector<8x4xf32>
    %16 = tpu.matmul %15, %2, %cst_14 {dimension_numbers = #tpu.dot_dimension_numbers<[1], [0], [0], [1], [0, 0, 1, 1], [], []>} : vector<8x64xf32>, vector<64x4xf32>, vector<8x4xf32> -> vector<8x4xf32>
    %c0_15 = arith.constant 0 : index
    %c0_16 = arith.constant 0 : index
    %17 = vector.load %arg7[%c0_15, %c0_16] : memref<1x4xf32, #tpu.memory_space<vmem>>, vector<1x4xf32>
    %18 = vector.broadcast %17 : vector<1x4xf32> to vector<8x4xf32>
    %19 = arith.addf %16, %18 : vector<8x4xf32>
    %c0_17 = arith.constant 0 : index
    %c0_18 = arith.constant 0 : index
    %20 = vector.load %arg8[%c0_17, %c0_18] : memref<8x4xf32, #tpu.memory_space<vmem>>, vector<8x4xf32>
    tpu.vector_store %arg8[%c0_17, %c0_18], %19 {strides = array<i32>} : memref<8x4xf32, #tpu.memory_space<vmem>>, vector<8x4xf32>,
    %21 = tpu.iota {dimensions = array<i32: 1>} : vector<8x4xi32>
    %cst_19 = arith.constant dense<0xFF800000> : vector<8xf32>
    %22 = vector.multi_reduction <maximumf>, %19, %cst_19 [1] : vector<8x4xf32> to vector<8xf32>
    %23 = vector.shape_cast %22 : vector<8xf32> to vector<8x1xf32>
    %24 = vector.broadcast %23 : vector<8x1xf32> to vector<8x4xf32>
    %25 = arith.cmpf oeq, %19, %24 : vector<8x4xf32>
    %c1073741824_i32 = arith.constant 1073741824 : i32
    %26 = vector.broadcast %c1073741824_i32 : i32 to vector<8x4xi32>
    %27 = arith.select %25, %21, %26 : vector<8x4xi1>, vector<8x4xi32>
    %cst_20 = arith.constant dense<2147483647> : vector<8xi32>
    %28 = vector.multi_reduction <minsi>, %27, %cst_20 [1] : vector<8x4xi32> to vector<8xi32>
    %29 = vector.shape_cast %28 : vector<8xi32> to vector<8x1xi32>
    %c0_21 = arith.constant 0 : index
    %c0_22 = arith.constant 0 : index
    %30 = vector.load %arg9[%c0_21, %c0_22] : memref<8x1xi32, #tpu.memory_space<vmem>>, vector<8x1xi32>
    tpu.vector_store %arg9[%c0_21, %c0_22], %29 {strides = array<i32>} : memref<8x1xi32, #tpu.memory_space<vmem>>, vector<8x1xi32>,
    return
  }
  func.func @transform_0(%arg0: i32) -> (i32, i32) {
    %c0_i32 = arith.constant 0 : i32
    %c0_i32_0 = arith.constant 0 : i32
    return %arg0, %c0_i32 : i32, i32
  }
  func.func @transform_1(%arg0: i32) -> (i32, i32) {
    %c0_i32 = arith.constant 0 : i32
    %c0_i32_0 = arith.constant 0 : i32
    %c0_i32_1 = arith.constant 0 : i32
    return %c0_i32, %c0_i32_0 : i32, i32
  }
  func.func @transform_2(%arg0: i32) -> (i32, i32) {
    %c0_i32 = arith.constant 0 : i32
    %c0_i32_0 = arith.constant 0 : i32
    %c0_i32_1 = arith.constant 0 : i32
    return %c0_i32, %c0_i32_0 : i32, i32
  }
  func.func @transform_3(%arg0: i32) -> (i32, i32) {
    %c0_i32 = arith.constant 0 : i32
    %c0_i32_0 = arith.constant 0 : i32
    %c0_i32_1 = arith.constant 0 : i32
    return %c0_i32, %c0_i32_0 : i32, i32
  }
  func.func @transform_4(%arg0: i32) -> (i32, i32) {
    %c0_i32 = arith.constant 0 : i32
    %c0_i32_0 = arith.constant 0 : i32
    %c0_i32_1 = arith.constant 0 : i32
    return %c0_i32, %c0_i32_0 : i32, i32
  }
  func.func @transform_5(%arg0: i32) -> (i32, i32) {
    %c0_i32 = arith.constant 0 : i32
    %c0_i32_0 = arith.constant 0 : i32
    %c0_i32_1 = arith.constant 0 : i32
    return %c0_i32, %c0_i32_0 : i32, i32
  }
  func.func @transform_6(%arg0: i32) -> (i32, i32) {
    %c0_i32 = arith.constant 0 : i32
    %c0_i32_0 = arith.constant 0 : i32
    %c0_i32_1 = arith.constant 0 : i32
    return %c0_i32, %c0_i32_0 : i32, i32
  }
  func.func @transform_7(%arg0: i32) -> (i32, i32) {
    %c0_i32 = arith.constant 0 : i32
    %c0_i32_0 = arith.constant 0 : i32
    return %arg0, %c0_i32 : i32, i32
  }
  func.func @transform_8(%arg0: i32) -> (i32, i32) {
    %c0_i32 = arith.constant 0 : i32
    %c0_i32_0 = arith.constant 0 : i32
    return %arg0, %c0_i32 : i32, i32
  }
}

</mosaic_0001>

<bundles_post_ra>
// kernel: tpu_custom_call.1
= control target key start
LH: loop header
LB: loop body
LE: loop exit
PB: predicated region body
PF: predicated region fallthrough
CT: control target
= control target key end

     0   :  { %v478_v0 = vmov 0.0|0.0   ;;  %vm479_vm0 = vmmov 0   ;;  %v480_v4 = vmov 0.0   ;;  %vm64_vm1 = vcmask 261120   ;;  %s645_s1 = inlined_call_operand.vmem [shape: f32[32,128], index: 1, kind: input, shape index: {}]   ;;  %s646_s3 = inlined_call_operand.vmem [shape: f32[128,64], index: 3, kind: input, shape index: {}]   ;;  %s647_s0 = inlined_call_operand.vmem [shape: f32[8,32], index: 0, kind: input, shape index: {}]   ;;  %s648_s5 = inlined_call_operand.vmem [shape: f32[64,4], index: 5, kind: input, shape index: {}]   ;;  %s649_s2 = inlined_call_operand.vmem [shape: f32[1,128], index: 2, kind: input, shape index: {}]   ;;  %s650_s4 = inlined_call_operand.vmem [shape: f32[1,64], index: 4, kind: input, shape index: {}]   ;;  %s651_s6 = inlined_call_operand.vmem [shape: f32[1,4], index: 6, kind: input, shape index: {}]   ;;  %s652_s7 = inlined_call_operand.vmem [shape: f32[8,4], index: 7, kind: output, shape index: {0}]   ;;  %s653_s8 = inlined_call_operand.vmem [shape: s32[8,1], index: 8, kind: output, shape index: {1}]  }
   0x1   :  { %433 = vmatprep.subr.bf16.mxu0 %v478_v0  ;;  %v28_v1 = vld [vmem:[%s645_s1] sm:$0xff]  ;;  %v29_v2 = vld [vmem:[%s645_s1 + $0x8] sm:$0xff]  ;;  %v30_v3 = vld [vmem:[%s645_s1 + $0x10] sm:$0xff]  ;;  %376 = vmatprep.mubr.msk.f32.mxu0 %vm479_vm0, %v480_v4  ;;  %vm224_vm2 = vcmask 523264   ;;  %vm298_vm3 = vcmask 31744   ;;  %v300_v60 = vlaneseq  ;;  %vm322_vm6 = vcmask 7168  }
   0x2   :  { %v434_v5 = vpack.c.bf16 %v29_v2, %v28_v1  ;;  %v31_v6 = vld [vmem:[%s645_s1 + $0x18] sm:$0xff]  ;;  %439 = vmatprep.subr.bf16.mxu1 %v478_v0  ;;  %v32_v7 = vld [vmem:[%s646_s3] sm:$0xff]  ;;  %411 = vmatprep.mubr.msk.f32.mxu1 %vm479_vm0, %v480_v4  ;;  %v33_v8 = vld [vmem:[%s646_s3 + $0x8] sm:$0xff] }
   0x3   :  { %v34_v9 = vld [vmem:[%s646_s3 + $0x10] sm:$0xff]  ;;  %v35_v10 = vld [vmem:[%s646_s3 + $0x18] sm:$0xff]  ;;  %v437_v11 = vpack.c.bf16 %v31_v6, %v30_v3  ;;  %v440_v12 = vpack.c.bf16 %v33_v8, %v32_v7  ;;  %v36_v14 = vld [vmem:[%s646_s3 + $0x20] sm:$0xff]  ;;  %v301_v61 = vand.u32 127, %v300_v60 }
   0x4   :  { %435 = vmatpush3.bf16.msra.mxu0 %v434_v5  ;;  %v443_v13 = vpack.c.bf16 %v35_v10, %v34_v9  ;;  %v37_v15 = vld [vmem:[%s646_s3 + $0x28] sm:$0xff]  ;;  %v56_v16 = vld [vmem:[%s647_s0] sm:$0xff]  ;;  %v38_v18 = vld [vmem:[%s646_s3 + $0x30] sm:$0xff] }
   0x5   :  { %436 = vmatprep.subr.bf16.mxu0 %v478_v0  ;;  %441 = vmatpush3.bf16.msra.mxu1 %v440_v12  ;;  %v446_v17 = vpack.c.bf16 %v37_v15, %v36_v14  ;;  %v39_v19 = vld [vmem:[%s646_s3 + $0x38] sm:$0xff]  ;;  %v40_v21 = vld [vmem:[%s646_s3 + $0x40] sm:$0xff]  ;;  %v41_v22 = vld [vmem:[%s646_s3 + $0x48] sm:$0xff] }
   0x6   :  { %442 = vmatprep.subr.bf16.mxu1 %v478_v0  ;;  %v449_v20 = vpack.c.bf16 %v39_v19, %v38_v18  ;;  %v452_v23 = vpack.c.bf16 %v41_v22, %v40_v21  ;;  %v42_v24 = vld [vmem:[%s646_s3 + $0x50] sm:$0xff]  ;;  %v43_v25 = vld [vmem:[%s646_s3 + $0x58] sm:$0xff]  ;;  %v44_v27 = vld [vmem:[%s646_s3 + $0x60] sm:$0xff] }
   0x7   :  { %v455_v26 = vpack.c.bf16 %v43_v25, %v42_v24  ;;  %v45_v28 = vld [vmem:[%s646_s3 + $0x68] sm:$0xff]  ;;  %v46_v30 = vld [vmem:[%s646_s3 + $0x70] sm:$0xff]  ;;  %v47_v31 = vld [vmem:[%s646_s3 + $0x78] sm:$0xff] }
   0x8   :  { %438 = vmatpush3.bf16.msra.mxu0 %v437_v11  ;;  %v458_v29 = vpack.c.bf16 %v45_v28, %v44_v27  ;;  %v461_v32 = vpack.c.bf16 %v47_v31, %v46_v30  ;;  %v48_v33 = vld [vmem:[%s648_s5] sm:$0xff]  ;;  %v49_v34 = vld [vmem:[%s648_s5 + $0x8] sm:$0xff]  ;;  %v50_v35 = vld [vmem:[%s648_s5 + $0x10] sm:$0xff] }
   0x9   :  { %463 = vmatprep.subr.bf16.mxu0 %v478_v0  ;;  %444 = vmatpush3.bf16.msra.mxu1 %v443_v13  ;;  %v464_v36 = vpack.c.bf16 %v49_v34, %v48_v33  ;;  %v51_v37 = vld [vmem:[%s648_s5 + $0x18] sm:$0xff]  ;;  %v52_v39 = vld [vmem:[%s648_s5 + $0x20] sm:$0xff]  ;;  %v53_v40 = vld [vmem:[%s648_s5 + $0x28] sm:$0xff] }
   0xa   :  { %445 = vmatprep.subr.bf16.mxu1 %v478_v0  ;;  %v467_v38 = vpack.c.bf16 %v51_v37, %v50_v35  ;;  %v470_v41 = vpack.c.bf16 %v53_v40, %v52_v39  ;;  %v332_v42 = vld [vmem:[%s649_s2] ss:$0 sm:$0xff]  ;;  %v54_v47 = vld [vmem:[%s648_s5 + $0x30] sm:$0xff]  ;;  %v55_v48 = vld [vmem:[%s648_s5 + $0x38] sm:$0xff] }
   0xb   :  { %377 = vmatmul.mubr.msk.f32.vlgmr.msra.gmra.mrb[0].mxu0 %vm64_vm1, %v56_v16  ;;  %v473_v49 = vpack.c.bf16 %v55_v48, %v54_v47  ;;  %v334_v50 = vld [vmem:[%s650_s4] ss:$0 sm:$0xff] }
   0xc   :  { %430 = vmatprep.mubr.msk.f32.mxu0 %vm479_vm0, %v480_v4  ;;  %465 = vmatpush3.bf16.msra.mxu0 %v464_v36  ;;  %v335_v55 = vld [vmem:[%s651_s6] ss:$0 sm:$0xff] }
   0xd   :  { %447 = vmatpush3.bf16.msra.mxu1 %v446_v17  ;;  %466 = vmatprep.subr.bf16.mxu0 %v478_v0 }
   0xe   :  { %448 = vmatprep.subr.bf16.mxu1 %v478_v0 }
  0x10   :  { %468 = vmatpush3.bf16.msra.mxu0 %v467_v38 }
  0x11   :  { %450 = vmatpush3.bf16.msra.mxu1 %v449_v20  ;;  %469 = vmatprep.subr.bf16.mxu0 %v478_v0 }
  0x12   :  { %451 = vmatprep.subr.bf16.mxu1 %v478_v0 }
  0x14   :  { %471 = vmatpush3.bf16.msra.mxu0 %v470_v41 }
  0x15   :  { %453 = vmatpush3.bf16.msra.mxu1 %v452_v23  ;;  %472 = vmatprep.subr.bf16.mxu0 %v478_v0 }
  0x16   :  { %454 = vmatprep.subr.bf16.mxu1 %v478_v0 }
  0x18   :  { %474 = vmatpush3.bf16.msra.mxu0 %v473_v49 }
  0x19   :  { %456 = vmatpush3.bf16.msra.mxu1 %v455_v26 }
  0x1a   :  { %457 = vmatprep.subr.bf16.mxu1 %v478_v0 }
  0x1d   :  { %459 = vmatpush3.bf16.msra.mxu1 %v458_v29 }
  0x1e   :  { %460 = vmatprep.subr.bf16.mxu1 %v478_v0 }
  0x21   :  { %462 = vmatpush3.bf16.msra.mxu1 %v461_v32 }
  0xde   :  { %v134_v43 = vpop.f32.mrb[0].mxu0 }
  0xdf   :  { %v135_v44 = vadd.f32 %v332_v42, %v134_v43  ;;  %v378_v45 = vpop.f32.mrb[1].mxu0 }
  0xe1   :  { %v138_v46 = vmax.f32 %v135_v44, 0.0 }
  0xe3   :  { %412 = vmatmul.mubr.f32.vlgmr.msra.gmra.mrb[0].mxu1 %v138_v46 }
 0x1b6   :  { %v212_v51 = vpop.f32.mrb[0].mxu1 }
 0x1b7   :  { %v213_v52 = vadd.f32 %v334_v50, %v212_v51  ;;  %v413_v53 = vpop.f32.mrb[1].mxu1 }
 0x1b9   :  { %v216_v54 = vmax.f32 %v213_v52, 0.0 }
 0x1bb   :  { %431 = vmatmul.mubr.msk.f32.vlgmr.msra.gmra.mrb[2].mxu0 %vm224_vm2, %v216_v54 }
 0x28e   :  { %v294_v56 = vpop.f32.mrb[2].mxu0 }
 0x28f   :  { %v295_v57 = vadd.f32 %v335_v55, %v294_v56  ;;  %v432_v58 = vpop.f32.mrb[3].mxu0 }
 0x291   :  { %v302_v59 = vsel %vm298_vm3, %v295_v57, -inf  ;;  %299 = vst.msk [vmem:[%s652_s7] sm:$0xff] %vm298_vm3, %v295_v57 }
 0x292   :  { %303 = vmax.xlane.f32.xlu0 %v302_v59 }
 0x31f   :  { %v304_v62 = vpop.xlane.xlu0 %303 }
 0x320   :  { %vm305_vm4 = vcmp.eq.f32.partialorder %v295_v57, %v304_v62 }
 0x321   :  { %v306_v63 = vsel %vm305_vm4, %v301_v61, 1073741824 }
 0x322   :  { %v307_v0 = vsel %vm298_vm3, %v306_v63, 2147483647 }
 0x323   :  { %v309_v1 = vshra.s32 %v307_v0, 16  ;;  %v308_v3 = vand.u32 65535, %v307_v0 }
 0x325   :  { %v311_v2 = vcvt.s32.f32 %v309_v1  ;;  %v310_v5 = vcvt.s32.f32 %v308_v3 }
 0x327   :  { %312 = vmin.xlane.f32.xlu0 %v311_v2 }
 0x3b4   :  { %v313_v4 = vpop.xlane.xlu0 %312 }
 0x3b5   :  { %vm314_vm5 = vcmp.eq.f32.partialorder %v311_v2, %v313_v4  ;;  %v319_v7 = vcvt.f32.s32 %v313_v4 }
 0x3b6   :  { %v315_v6 = vsel %vm314_vm5, %v310_v5, inf }
 0x3b7   :  { %316 = vmin.xlane.f32.xlu1 %v315_v6  ;;  %v320_v9 = vshll.u32 %v319_v7, 16 }
 0x444   :  { %v317_v8 = vpop.xlane.xlu1 %316 }
 0x445   :  { %v318_v10 = vcvt.f32.s32 %v317_v8 }
 0x447   :  { %v321_v11 = vadd.s32 %v320_v9, %v318_v10 }
 0x449   :  { %323 = vst.msk [vmem:[%s653_s8] sm:$0xff] %vm322_vm6, %v321_v11 }

</bundles_post_ra>
